<compile_context>
chip_gen: v6e
topology: v6e:2x2x1
jax: 0.10.0
libtpu: 0.0.40
codegen_flags: <defaults>
</compile_context>

<pallas_src>
import functools

import numpy as np
import jax
import jax.numpy as jnp
from jax.experimental import pallas as pl
from jax.experimental.pallas import tpu as pltpu


# ----------------------------------------------------- trace-time constants --

def _interp_matrix_np(in_size, out_size, align_corners):
    """1-D bilinear interpolation matrix (out_size, in_size), PyTorch semantics."""
    j = np.arange(out_size, dtype=np.float64)
    if align_corners:
        scale = (in_size - 1) / (out_size - 1) if out_size > 1 else 0.0
        src = j * scale
    else:
        src = (j + 0.5) * (in_size / out_size) - 0.5
        src = np.maximum(src, 0.0)
    i0 = np.clip(np.floor(src).astype(np.int64), 0, in_size - 1)
    i1 = np.minimum(i0 + 1, in_size - 1)
    lam = src - i0
    m = np.zeros((out_size, in_size), np.float64)
    m[np.arange(out_size), i0] += 1.0 - lam
    m[np.arange(out_size), i1] += lam
    return m.astype(np.float32)


def _row_terms(mat):
    """Per output row: list of (input_index, python-float weight) non-zero terms."""
    terms = []
    for r in range(mat.shape[0]):
        nz = np.nonzero(mat[r] != 0.0)[0]
        if len(nz) == 0:
            terms.append([(0, 0.0)])
        else:
            terms.append([(int(c), float(mat[r, c])) for c in nz])
    return terms


def _pick_tile_rows(m, row_bytes, cap_bytes=4 << 20):
    """Largest row tile whose bf16 activation block stays under cap_bytes.
    No forced grid>=2 split (single-TC chips would only pay per-step overhead)."""
    t = max(16, cap_bytes // max(1, row_bytes))
    if t >= m:
        return m
    return max(16, (t // 16) * 16)          # bf16 sublane packing


# ------------------------------------------------------------------ kernels --

def _pw_conv_kernel(x_ref, w_ref, scale_ref, shift_ref, o_ref):
    """1x1 conv as (TM, Cin) @ (Cin, Cout) + folded eval-BN affine + ReLU."""
    y = jnp.dot(x_ref[...], w_ref[...], preferred_element_type=jnp.float32)
    y = y * scale_ref[...] + shift_ref[...]          # f32 epilogue
    y = jnp.maximum(y, 0.0)
    o_ref[...] = y.astype(o_ref.dtype)


def _pool_conv_kernel(x_ref, pw_ref, wt_ref, b_ref, o_ref, *, h_starts, kh):
    """Fused AvgPool2d -> 1x1 conv -> sigmoid for one batch element (NHWC).

    x_ref : (Hd, Wd, Cd) bf16   pw_ref: (Wp, Wd) f32 (1/kw folded in)
    wt_ref: (Cd, hidden) bf16   b_ref : (1, hidden) f32
    o_ref : (Hp, Wp, hidden) bf16
    """
    inv_kh = 1.0 / float(kh)
    pw = pw_ref[...]
    wt = wt_ref[...]
    bias = b_ref[...]
    for hp, h0 in enumerate(h_starts):
        # Mean over the H window on natural (Wd, Cd) lane-dense tiles.
        acc = x_ref[h0].astype(jnp.float32)
        for dh in range(1, kh):
            acc = acc + x_ref[h0 + dh].astype(jnp.float32)
        acc = acc * inv_kh
        pooled = jnp.dot(pw, acc, preferred_element_type=jnp.float32)   # (Wp, Cd)
        y = jnp.dot(pooled.astype(jnp.bfloat16), wt,
                    preferred_element_type=jnp.float32)                 # (Wp, hidden)
        y = jax.nn.sigmoid(y + bias)
        o_ref[hp] = y.astype(o_ref.dtype)


def _se_up_out_kernel(w_ref, b_ref, sh_ref, b1_ref, b2_ref, wo_ref, wsc_ref,
                      bias_ref, o_ref, *, a1_terms, a2_terms):
    """Fused per batch element (NHWC, channels on lanes everywhere):
       resize(w, bilinear) * block  ->  2x bilinear upsample (align_corners=True)
       ->  1x1 conv(hidden->Cout)   +   1x1 shortcut conv(Cs->Cout)  +  bias.

    w_ref : (Hp, Wp, hidden) bf16     b_ref : (Hd, Wd, hidden) bf16
    sh_ref: (Hs, Ws, Cs)    bf16      b1_ref: (Wd, Wp) f32   b2_ref: (Ws, Wd) bf16
    wo_ref: (hidden, Cout)  bf16      wsc_ref: (Cs, Cout) bf16
    bias_ref: (1, Cout) f32           o_ref : (Hs, Ws, Cout) f32
    """
    hp_n = w_ref.shape[0]
    b1 = b1_ref[...]
    b2 = b2_ref[...]
    wo = wo_ref[...]
    wsc = wsc_ref[...]
    bias = bias_ref[...]

    # 1) Width-resize of the SE gate: (Wd, Wp) @ (Wp, hidden) per gate row.
    wcols = [jnp.dot(b1, w_ref[p].astype(jnp.float32),
                     preferred_element_type=jnp.float32)
             for p in range(hp_n)]                                   # (Wd, hidden) f32

    # 2) Per deep row: height-resize of the gate (<=2 static terms), SE multiply,
    #    width up-mix, and the hidden->Cout projection (commutes with the H up-mix).
    proj = []
    for terms, hd in zip(a1_terms, range(len(a1_terms))):
        gate = terms[0][1] * wcols[terms[0][0]]
        for (p, wgt) in terms[1:]:
            gate = gate + wgt * wcols[p]
        se = gate * b_ref[hd].astype(jnp.float32)                    # (Wd, hidden)
        se_w = jnp.dot(b2, se.astype(jnp.bfloat16),
                       preferred_element_type=jnp.float32)           # (Ws, hidden)
        proj.append(jnp.dot(se_w.astype(jnp.bfloat16), wo,
                            preferred_element_type=jnp.float32))     # (Ws, Cout)

    # 3) Per output row: height up-mix (<=2 static terms) + shortcut conv + bias.
    for hs, terms in enumerate(a2_terms):
        acc = terms[0][1] * proj[terms[0][0]]
        for (d, wgt) in terms[1:]:
            acc = acc + wgt * proj[d]
        acc = acc + jnp.dot(sh_ref[hs], wsc, preferred_element_type=jnp.float32)
        o_ref[hs] = (acc + bias).astype(o_ref.dtype)


# ----------------------------------------------------------------- wrappers --

def pw_conv_bn_relu(x, w, scale, shift, out_dtype=jnp.bfloat16):
    m, cin = x.shape
    cout = w.shape[1]
    tm = _pick_tile_rows(m, cin * 2)
    vmem_est = 2 * (tm * cin * 2 + tm * cout * 2) + cin * cout * 2 + (2 << 20)
    vmem_limit = int(min(max(vmem_est, 32 << 20), 48 << 20))   # < 64 MiB (v7x safe)
    return pl.pallas_call(
        _pw_conv_kernel,
        out_shape=jax.ShapeDtypeStruct((m, cout), out_dtype),
        grid=(pl.cdiv(m, tm),),
        in_specs=[
            pl.BlockSpec((tm, cin), lambda i: (i, 0)),
            pl.BlockSpec((cin, cout), lambda i: (0, 0)),
            pl.BlockSpec((1, cout), lambda i: (0, 0)),
            pl.BlockSpec((1, cout), lambda i: (0, 0)),
        ],
        out_specs=pl.BlockSpec((tm, cout), lambda i: (i, 0)),
        compiler_params=pltpu.CompilerParams(
            dimension_semantics=("parallel",),
            vmem_limit_bytes=vmem_limit),
    )(x.astype(jnp.bfloat16), w.astype(jnp.bfloat16),
      scale.astype(jnp.float32), shift.astype(jnp.float32))


def se_weight_branch(deep_nhwc, w_conv_w, w_conv_b, pool_k, pool_s):
    n, hd, wd, cd = deep_nhwc.shape
    kh, kw = pool_k
    sh, sw = pool_s
    hp = (hd - kh) // sh + 1
    wp = (wd - kw) // sw + 1
    hidden = w_conv_w.shape[1]
    h_starts = tuple(i * sh for i in range(hp))
    pw = np.zeros((wp, wd), np.float32)
    for q in range(wp):
        pw[q, q * sw:q * sw + kw] = 1.0 / kw
    kern = functools.partial(_pool_conv_kernel, h_starts=h_starts, kh=kh)
    return pl.pallas_call(
        kern,
        out_shape=jax.ShapeDtypeStruct((n, hp, wp, hidden), jnp.bfloat16),
        grid=(n,),
        in_specs=[
            pl.BlockSpec((None, hd, wd, cd), lambda i: (i, 0, 0, 0)),
            pl.BlockSpec((wp, wd), lambda i: (0, 0)),
            pl.BlockSpec((cd, hidden), lambda i: (0, 0)),
            pl.BlockSpec((1, hidden), lambda i: (0, 0)),
        ],
        out_specs=pl.BlockSpec((None, hp, wp, hidden), lambda i: (i, 0, 0, 0)),
        compiler_params=pltpu.CompilerParams(dimension_semantics=("parallel",)),
    )(deep_nhwc, jnp.asarray(pw), w_conv_w.astype(jnp.bfloat16),
      w_conv_b.reshape(1, hidden).astype(jnp.float32))


def se_upsample_out(w_gate, b_act, shallow_nhwc, out_w, out_b, sc_w, sc_b):
    n, hp, wp, hidden = w_gate.shape
    _, hd, wd, _ = b_act.shape
    _, hs, ws, cs = shallow_nhwc.shape
    cout = out_w.shape[1]
    # Interp matrices are trace-time numpy constants (static shapes only).
    a1 = _interp_matrix_np(hp, hd, align_corners=False)   # (hd, hp)
    b1 = _interp_matrix_np(wp, wd, align_corners=False)   # (wd, wp)
    a2 = _interp_matrix_np(hd, hs, align_corners=True)    # (hs, hd)
    b2 = _interp_matrix_np(wd, ws, align_corners=True)    # (ws, wd)
    kern = functools.partial(_se_up_out_kernel,
                             a1_terms=_row_terms(a1), a2_terms=_row_terms(a2))
    bias = (out_b + sc_b).reshape(1, cout).astype(jnp.float32)
    return pl.pallas_call(
        kern,
        out_shape=jax.ShapeDtypeStruct((n, hs, ws, cout), jnp.float32),
        grid=(n,),
        in_specs=[
            pl.BlockSpec((None, hp, wp, hidden), lambda i: (i, 0, 0, 0)),
            pl.BlockSpec((None, hd, wd, hidden), lambda i: (i, 0, 0, 0)),
            pl.BlockSpec((None, hs, ws, cs), lambda i: (i, 0, 0, 0)),
            pl.BlockSpec((wd, wp), lambda i: (0, 0)),
            pl.BlockSpec((ws, wd), lambda i: (0, 0)),
            pl.BlockSpec((hidden, cout), lambda i: (0, 0)),
            pl.BlockSpec((cs, cout), lambda i: (0, 0)),
            pl.BlockSpec((1, cout), lambda i: (0, 0)),
        ],
        out_specs=pl.BlockSpec((None, hs, ws, cout), lambda i: (i, 0, 0, 0)),
        compiler_params=pltpu.CompilerParams(dimension_semantics=("parallel",)),
    )(w_gate, b_act, shallow_nhwc,
      jnp.asarray(b1, jnp.float32), jnp.asarray(b2, jnp.bfloat16),
      out_w.astype(jnp.bfloat16), sc_w.astype(jnp.bfloat16), bias)


# --------------------------------------------------------------- forward pass --

def lraspp_forward(shallow_x, deep_x, params, pool_k, pool_s):
    n, cd, hd, wd = deep_x.shape
    _, cs, hs, ws = shallow_x.shape
    hidden = params["se_conv_w"].shape[1]
    cout = params["out_conv_w"].shape[1]

    # Single boundary relayout NCHW -> NHWC (channels on lanes for every kernel).
    deep_nhwc = jnp.transpose(deep_x, (0, 2, 3, 1)).astype(jnp.bfloat16)
    shallow_nhwc = jnp.transpose(shallow_x, (0, 2, 3, 1)).astype(jnp.bfloat16)

    # SE "block": 1x1 conv (bias=False) + folded eval BatchNorm + ReLU.
    bn_scale = params["bn_gamma"] / jnp.sqrt(params["bn_var"] + 1e-5)
    bn_shift = params["bn_beta"] - params["bn_mean"] * bn_scale
    b_flat = pw_conv_bn_relu(deep_nhwc.reshape(n * hd * wd, cd),
                             params["se_conv_w"],
                             bn_scale.reshape(1, hidden),
                             bn_shift.reshape(1, hidden))
    b_act = b_flat.reshape(n, hd, wd, hidden)            # free (contiguous) reshape

    # SE "weight": AvgPool2d -> 1x1 conv -> Sigmoid, fused in one kernel.
    w_gate = se_weight_branch(deep_nhwc, params["w_conv_w"], params["w_conv_b"],
                              pool_k, pool_s)

    # resize(w)*block -> 2x upsample -> conv(hidden->Cout) + shortcut conv + bias.
    out_nhwc = se_upsample_out(w_gate, b_act, shallow_nhwc,
                               params["out_conv_w"], params["out_conv_b"],
                               params["sc_conv_w"], params["sc_conv_b"])
    return jnp.transpose(out_nhwc, (0, 3, 1, 2))         # back to NCHW, f32


# --------------------------------------------------------------------- main --

if __name__ == "__main__":
    N = 2
    Cs, Cd = 4, 8            # shallow / deep input channels
    hidden, Cout = 32, 8
    Hd = Wd = 8              # deep feature map
    Hs = Ws = 16             # shallow feature map (= 2 * deep, required by final add)
    pool_k, pool_s = (2, 2), (2, 2)   # small analogue of the paper's (49,49)/(16,20)

    key = jax.random.PRNGKey(0)
    ks = jax.random.split(key, 13)
    shallow_x = jax.random.normal(ks[0], (N, Cs, Hs, Ws), jnp.float32)
    deep_x = jax.random.normal(ks[1], (N, Cd, Hd, Wd), jnp.float32)

    params = dict(
        # SEBlock.block : Conv2d(Cd, hidden, 1, bias=False) + BN(hidden) + ReLU
        se_conv_w=jax.random.normal(ks[2], (Cd, hidden), jnp.float32) * 0.2,
        bn_gamma=jax.random.uniform(ks[3], (hidden,), jnp.float32, 0.5, 1.5),
        bn_beta=jax.random.normal(ks[4], (hidden,), jnp.float32) * 0.1,
        bn_mean=jax.random.normal(ks[5], (hidden,), jnp.float32) * 0.1,
        bn_var=jax.random.uniform(ks[6], (hidden,), jnp.float32, 0.5, 1.5),
        # SEBlock.weight : AvgPool + Conv2d(Cd, hidden, 1) + Sigmoid
        w_conv_w=jax.random.normal(ks[7], (Cd, hidden), jnp.float32) * 0.2,
        w_conv_b=jax.random.normal(ks[8], (hidden,), jnp.float32) * 0.1,
        # LRASPP.block[-1] : Conv2d(hidden, Cout, 1)
        out_conv_w=jax.random.normal(ks[9], (hidden, Cout), jnp.float32) * 0.2,
        out_conv_b=jax.random.normal(ks[10], (Cout,), jnp.float32) * 0.1,
        # LRASPP.shortcut : Conv2d(Cs, Cout, 1)
        sc_conv_w=jax.random.normal(ks[11], (Cs, Cout), jnp.float32) * 0.2,
        sc_conv_b=jax.random.normal(ks[12], (Cout,), jnp.float32) * 0.1,
    )

    out = lraspp_forward(shallow_x, deep_x, params, pool_k, pool_s)
    out = jax.block_until_ready(out)
    assert out.shape == (N, Cout, Hs, Ws), out.shape
    assert bool(jnp.all(jnp.isfinite(out)))
    print("KERNEL_OK")
</pallas_src>

<mosaic_0001>
module attributes {stable_mosaic.version = 11 : i64} {
  func.func @_pw_conv_kernel(%arg0: i32, %arg1: memref<128x8xbf16, #tpu.memory_space<vmem>>, %arg2: memref<8x32xbf16, #tpu.memory_space<vmem>>, %arg3: memref<1x32xf32, #tpu.memory_space<vmem>>, %arg4: memref<1x32xf32, #tpu.memory_space<vmem>>, %arg5: memref<128x32xbf16, #tpu.memory_space<vmem>>) attributes {dimension_semantics = [#tpu.dimension_semantics<parallel>], iteration_bounds = array<i64: 1>, scalar_prefetch = 0 : i64, scratch_operands = 0 : i64, tpu.core_type = #tpu.core_type<tc>, window_params = [{transform_indices = @transform_0, window_bounds = array<i64: 128, 8>}, {pipeline_mode = #tpu.pipeline_mode<synchronous>, transform_indices = @transform_1, window_bounds = array<i64: 8, 32>}, {pipeline_mode = #tpu.pipeline_mode<synchronous>, transform_indices = @transform_2, window_bounds = array<i64: 1, 32>}, {pipeline_mode = #tpu.pipeline_mode<synchronous>, transform_indices = @transform_3, window_bounds = array<i64: 1, 32>}, {transform_indices = @transform_4, window_bounds = array<i64: 128, 32>}]} {
    %c0 = arith.constant 0 : index
    %c0_0 = arith.constant 0 : index
    %0 = vector.load %arg1[%c0, %c0_0] : memref<128x8xbf16, #tpu.memory_space<vmem>>, vector<128x8xbf16>
    %c0_1 = arith.constant 0 : index
    %c0_2 = arith.constant 0 : index
    %1 = vector.load %arg2[%c0_1, %c0_2] : memref<8x32xbf16, #tpu.memory_space<vmem>>, vector<8x32xbf16>
    %cst = arith.constant dense<0.000000e+00> : vector<128x32xf32>
    %2 = tpu.matmul %0, %1, %cst {dimension_numbers = #tpu.dot_dimension_numbers<[1], [0], [0], [1], [0, 0, 1, 1], [], []>} : vector<128x8xbf16>, vector<8x32xbf16>, vector<128x32xf32> -> vector<128x32xf32>
    %c0_3 = arith.constant 0 : index
    %c0_4 = arith.constant 0 : index
    %3 = vector.load %arg3[%c0_3, %c0_4] : memref<1x32xf32, #tpu.memory_space<vmem>>, vector<1x32xf32>
    %4 = vector.broadcast %3 : vector<1x32xf32> to vector<128x32xf32>
    %5 = arith.mulf %2, %4 : vector<128x32xf32>
    %c0_5 = arith.constant 0 : index
    %c0_6 = arith.constant 0 : index
    %6 = vector.load %arg4[%c0_5, %c0_6] : memref<1x32xf32, #tpu.memory_space<vmem>>, vector<1x32xf32>
    %7 = vector.broadcast %6 : vector<1x32xf32> to vector<128x32xf32>
    %8 = arith.addf %5, %7 : vector<128x32xf32>
    %cst_7 = arith.constant 0.000000e+00 : f32
    %9 = vector.broadcast %cst_7 : f32 to vector<128x32xf32>
    %10 = arith.maximumf %8, %9 : vector<128x32xf32>
    %11 = arith.truncf %10 : vector<128x32xf32> to vector<128x32xbf16>
    %c0_8 = arith.constant 0 : index
    %c0_9 = arith.constant 0 : index
    %12 = vector.load %arg5[%c0_8, %c0_9] : memref<128x32xbf16, #tpu.memory_space<vmem>>, vector<128x32xbf16>
    tpu.vector_store %arg5[%c0_8, %c0_9], %11 {strides = array<i32>} : memref<128x32xbf16, #tpu.memory_space<vmem>>, vector<128x32xbf16>,
    return
  }
  func.func @transform_0(%arg0: i32) -> (i32, i32) {
    %c0_i32 = arith.constant 0 : i32
    %c0_i32_0 = arith.constant 0 : i32
    return %arg0, %c0_i32 : i32, i32
  }
  func.func @transform_1(%arg0: i32) -> (i32, i32) {
    %c0_i32 = arith.constant 0 : i32
    %c0_i32_0 = arith.constant 0 : i32
    %c0_i32_1 = arith.constant 0 : i32
    return %c0_i32, %c0_i32_0 : i32, i32
  }
  func.func @transform_2(%arg0: i32) -> (i32, i32) {
    %c0_i32 = arith.constant 0 : i32
    %c0_i32_0 = arith.constant 0 : i32
    %c0_i32_1 = arith.constant 0 : i32
    return %c0_i32, %c0_i32_0 : i32, i32
  }
  func.func @transform_3(%arg0: i32) -> (i32, i32) {
    %c0_i32 = arith.constant 0 : i32
    %c0_i32_0 = arith.constant 0 : i32
    %c0_i32_1 = arith.constant 0 : i32
    return %c0_i32, %c0_i32_0 : i32, i32
  }
  func.func @transform_4(%arg0: i32) -> (i32, i32) {
    %c0_i32 = arith.constant 0 : i32
    %c0_i32_0 = arith.constant 0 : i32
    return %arg0, %c0_i32 : i32, i32
  }
}

</mosaic_0001>

<bundles_post_ra>
// kernel: tpu_custom_call.1
= control target key start
LH: loop header
LB: loop body
LE: loop exit
PB: predicated region body
PF: predicated region fallthrough
CT: control target
= control target key end

     0   :  { %vm100_vm0 = vcmask 1043456   ;;  %vm75_vm1 = vcmask 64512   ;;  %vm327_vm2 = vcmask 257024   ;;  %s603_s1 = inlined_call_operand.vmem [shape: bf16[8,32], index: 1, kind: input, shape index: {}]   ;;  %s604_s0 = inlined_call_operand.vmem [shape: bf16[128,8], index: 0, kind: input, shape index: {}]   ;;  %s605_s2 = inlined_call_operand.vmem [shape: f32[1,32], index: 2, kind: input, shape index: {}]   ;;  %s606_s3 = inlined_call_operand.vmem [shape: f32[1,32], index: 3, kind: input, shape index: {}]   ;;  %s607_s4 = inlined_call_operand.vmem [shape: bf16[128,32], index: 4, kind: output, shape index: {}]  }
   0x1   :  { %v34_v0 = vld [vmem:[%s603_s1] sm:$0xf]  ;;  %v431_v4 = vld [vmem:[%s604_s0 + $0x8] sm:$0xff]   ;;  %v433_v6 = vld [vmem:[%s604_s0 + $0x10] sm:$0xff]  }
   0x2   :  { %427 = vmatprep.subr.msk.bf16.mxu0 %vm100_vm0, %v34_v0  ;;  %428 = vmatprep.subr.msk.bf16.mxu1 %vm100_vm0, %v34_v0  ;;  %v102_v1 = vsel %vm100_vm0, %v34_v0, 0  ;;  %v429_v2 = vld [vmem:[%s604_s0] sm:$0xff]   ;;  %v432_v5 = vld [vmem:[%s604_s0 + $0x28] sm:$0xff]   ;;  %v434_v7 = vld [vmem:[%s604_s0 + $0x30] sm:$0xff]  }
   0x3   :  { %408 = vmatpush3.bf16.msra.mxu0 %v102_v1  ;;  %426 = vmatpush3.bf16.msra.mxu1 %v102_v1  ;;  %v430_v3 = vld [vmem:[%s604_s0 + $0x20] sm:$0xff]   ;;  %v435_v8 = vld [vmem:[%s604_s0 + $0x18] sm:$0xff]  }
   0x4   :  { %409 = vmatprep.mubr.msk.bf16.mxu0 %vm75_vm1, %v429_v2  ;;  %417 = vmatprep.mubr.msk.bf16.mxu1 %vm75_vm1, %v430_v3  ;;  %v436_v9 = vld [vmem:[%s604_s0 + $0x38] sm:$0xff]   ;;  %v500_v10 = vld [vmem:[%s605_s2] ss:$0 sm:$0xff] }
   0x5   :  { %v505_v12 = vld [vmem:[%s606_s3] ss:$0 sm:$0xff] }
   0x6   :  { %410 = vmatmul.mubr.msk.bf16.vlgmr.msra.gmra.mxu0 %vm75_vm1, %v431_v4  ;;  %418 = vmatmul.mubr.msk.bf16.vlgmr.msra.gmra.mxu1 %vm75_vm1, %v432_v5 }
   0x7   :  { %413 = vmatprep.mubr.msk.bf16.mxu0 %vm75_vm1, %v433_v6  ;;  %421 = vmatprep.mubr.msk.bf16.mxu1 %vm75_vm1, %v434_v7 }
   0xe   :  { %414 = vmatmul.mubr.msk.bf16.gmra.mxu0 %vm75_vm1, %v435_v8  ;;  %422 = vmatmul.mubr.msk.bf16.gmra.mxu1 %vm75_vm1, %v436_v9 }
  0xc6   :  { %v411_v11 = vpop.f32.mrf.mxu0  ;;  %v419_v14 = vpop.f32.mrf.mxu1 }
  0xc7   :  { %v210_v13 = vmul.f32 %v411_v11, %v500_v10  ;;  %v218_v15 = vmul.f32 %v419_v14, %v500_v10 }
  0xc8   :  { %v138_v16 = vpop.f32.mrf.mxu0  ;;  %v170_v19 = vpop.f32.mrf.mxu1 }
  0xc9   :  { %v233_v17 = vadd.f32 %v505_v12, %v210_v13  ;;  %v208_v18 = vmul.f32 %v500_v10, %v138_v16  ;;  %v241_v20 = vadd.f32 %v505_v12, %v218_v15  ;;  %v216_v21 = vmul.f32 %v500_v10, %v170_v19 }
  0xca   :  { %v412_v22 = vpop.f32.mrf.mxu0  ;;  %v420_v26 = vpop.f32.mrf.mxu1 }
  0xcb   :  { %v249_v23 = vmax.f32 %v233_v17, 0.0  ;;  %v231_v24 = vadd.f32 %v505_v12, %v208_v18  ;;  %v211_v25 = vmul.f32 %v412_v22, %v500_v10  ;;  %v257_v27 = vmax.f32 %v241_v20, 0.0 }
  0xcc   :  { %v239_v28 = vadd.f32 %v505_v12, %v216_v21  ;;  %v219_v29 = vmul.f32 %v420_v26, %v500_v10  ;;  %v141_v30 = vpop.f32.mrf.mxu0  ;;  %v173_v35 = vpop.f32.mrf.mxu1 }
  0xcd   :  { %v384_v31 = vpack.c.bf16 %v249_v23, %v249_v23  ;;  %v247_v32 = vmax.f32 %v231_v24, 0.0  ;;  %v234_v33 = vadd.f32 %v505_v12, %v211_v25  ;;  %v209_v34 = vmul.f32 %v500_v10, %v141_v30 }
  0xce   :  { %v392_v36 = vpack.c.bf16 %v257_v27, %v257_v27  ;;  %v255_v37 = vmax.f32 %v239_v28, 0.0  ;;  %v242_v38 = vadd.f32 %v505_v12, %v219_v29  ;;  %v217_v39 = vmul.f32 %v500_v10, %v173_v35  ;;  %v415_v40 = vpop.f32.mrf.mxu0  ;;  %v423_v45 = vpop.f32.mrf.mxu1 }
  0xcf   :  { %330 = vst.msk [vmem:[%s607_s4 + $0x8] sm:$0xf] %vm327_vm2, %v384_v31  ;;  %v382_v41 = vpack.c.bf16 %v247_v32, %v247_v32  ;;  %v250_v42 = vmax.f32 %v234_v33, 0.0  ;;  %v232_v43 = vadd.f32 %v505_v12, %v209_v34  ;;  %v214_v44 = vmul.f32 %v415_v40, %v500_v10 }
  0xd0   :  { %338 = vst.msk [vmem:[%s607_s4 + $0x28] sm:$0xf] %vm327_vm2, %v392_v36  ;;  %v390_v46 = vpack.c.bf16 %v255_v37, %v255_v37  ;;  %v258_v47 = vmax.f32 %v242_v38, 0.0  ;;  %v240_v48 = vadd.f32 %v505_v12, %v217_v39  ;;  %v222_v49 = vmul.f32 %v423_v45, %v500_v10  ;;  %v154_v50 = vpop.f32.mrf.mxu0  ;;  %v186_v55 = vpop.f32.mrf.mxu1 }
  0xd1   :  { %328 = vst.msk [vmem:[%s607_s4] sm:$0xf] %vm327_vm2, %v382_v41  ;;  %v385_v51 = vpack.c.bf16 %v250_v42, %v250_v42  ;;  %v248_v52 = vmax.f32 %v232_v43, 0.0  ;;  %v237_v53 = vadd.f32 %v505_v12, %v214_v44  ;;  %v212_v54 = vmul.f32 %v500_v10, %v154_v50 }
  0xd2   :  { %336 = vst.msk [vmem:[%s607_s4 + $0x20] sm:$0xf] %vm327_vm2, %v390_v46  ;;  %v393_v56 = vpack.c.bf16 %v258_v47, %v258_v47  ;;  %v256_v57 = vmax.f32 %v240_v48, 0.0  ;;  %v245_v58 = vadd.f32 %v505_v12, %v222_v49  ;;  %v220_v59 = vmul.f32 %v500_v10, %v186_v55  ;;  %v416_v60 = vpop.f32.mrf.mxu0  ;;  %v424_v1 = vpop.f32.mrf.mxu1 }
  0xd3   :  { %331 = vst.msk [vmem:[%s607_s4 + $0xc] sm:$0xf] %vm327_vm2, %v385_v51  ;;  %v383_v61 = vpack.c.bf16 %v248_v52, %v248_v52  ;;  %v253_v62 = vmax.f32 %v237_v53, 0.0  ;;  %v235_v63 = vadd.f32 %v505_v12, %v212_v54  ;;  %v215_v0 = vmul.f32 %v416_v60, %v500_v10 }
  0xd4   :  { %339 = vst.msk [vmem:[%s607_s4 + $0x2c] sm:$0xf] %vm327_vm2, %v393_v56  ;;  %v391_v2 = vpack.c.bf16 %v256_v57, %v256_v57  ;;  %v261_v3 = vmax.f32 %v245_v58, 0.0  ;;  %v243_v4 = vadd.f32 %v505_v12, %v220_v59  ;;  %v223_v5 = vmul.f32 %v424_v1, %v500_v10  ;;  %v157_v6 = vpop.f32.mrf.mxu0  ;;  %v189_v13 = vpop.f32.mrf.mxu1 }
  0xd5   :  { %329 = vst.msk [vmem:[%s607_s4 + $0x4] sm:$0xf] %vm327_vm2, %v383_v61  ;;  %v388_v7 = vpack.c.bf16 %v253_v62, %v253_v62  ;;  %v251_v8 = vmax.f32 %v235_v63, 0.0  ;;  %v238_v9 = vadd.f32 %v505_v12, %v215_v0  ;;  %v213_v11 = vmul.f32 %v500_v10, %v157_v6 }
  0xd6   :  { %337 = vst.msk [vmem:[%s607_s4 + $0x24] sm:$0xf] %vm327_vm2, %v391_v2  ;;  %v396_v14 = vpack.c.bf16 %v261_v3, %v261_v3  ;;  %v259_v15 = vmax.f32 %v243_v4, 0.0  ;;  %v246_v16 = vadd.f32 %v505_v12, %v223_v5  ;;  %v221_v17 = vmul.f32 %v500_v10, %v189_v13 }
  0xd7   :  { %334 = vst.msk [vmem:[%s607_s4 + $0x18] sm:$0xf] %vm327_vm2, %v388_v7  ;;  %v386_v18 = vpack.c.bf16 %v251_v8, %v251_v8  ;;  %v254_v19 = vmax.f32 %v238_v9, 0.0  ;;  %v236_v20 = vadd.f32 %v505_v12, %v213_v11 }
  0xd8   :  { %342 = vst.msk [vmem:[%s607_s4 + $0x38] sm:$0xf] %vm327_vm2, %v396_v14  ;;  %v394_v21 = vpack.c.bf16 %v259_v15, %v259_v15  ;;  %v262_v22 = vmax.f32 %v246_v16, 0.0  ;;  %v244_v23 = vadd.f32 %v505_v12, %v221_v17 }
  0xd9   :  { %332 = vst.msk [vmem:[%s607_s4 + $0x10] sm:$0xf] %vm327_vm2, %v386_v18  ;;  %v389_v10 = vpack.c.bf16 %v254_v19, %v254_v19  ;;  %v252_v24 = vmax.f32 %v236_v20, 0.0 }
  0xda   :  { %340 = vst.msk [vmem:[%s607_s4 + $0x30] sm:$0xf] %vm327_vm2, %v394_v21  ;;  %v397_v25 = vpack.c.bf16 %v262_v22, %v262_v22  ;;  %v260_v26 = vmax.f32 %v244_v23, 0.0 }
  0xdb   :  { %335 = vst.msk [vmem:[%s607_s4 + $0x1c] sm:$0xf] %vm327_vm2, %v389_v10  ;;  %v387_v12 = vpack.c.bf16 %v252_v24, %v252_v24 }
  0xdc   :  { %343 = vst.msk [vmem:[%s607_s4 + $0x3c] sm:$0xf] %vm327_vm2, %v397_v25  ;;  %v395_v27 = vpack.c.bf16 %v260_v26, %v260_v26 }
  0xdd   :  { %333 = vst.msk [vmem:[%s607_s4 + $0x14] sm:$0xf] %vm327_vm2, %v387_v12 }
  0xde   :  { %341 = vst.msk [vmem:[%s607_s4 + $0x34] sm:$0xf] %vm327_vm2, %v395_v27 }

</bundles_post_ra>
